<compile_context>
chip_gen: v5e
topology: v5e:2x2
jax: 0.10.0
libtpu: 0.0.40
codegen_flags: <defaults>
</compile_context>

<pallas_src>
import functools

import jax
import jax.numpy as jnp
from jax import lax
from jax.experimental import pallas as pl
from jax.experimental.pallas import tpu as pltpu


def _round_up(x, m):
    return (x + m - 1) // m * m


def _round_down(x, m):
    return (x // m) * m


def _ce_sum_kernel(logits_ref, targets_ref, out_ref, *, n_valid, tile_n):
    """Accumulates sum_i [logsumexp(logits_i) - logits_i[target_i]] over tiles.

    logits_ref : (TILE_N, C_pad) float VMEM tile (class-padded with big negative)
    targets_ref: (TILE_N, 1) int32 VMEM tile (padded rows hold -1)
    out_ref    : (1, 1) float32 SMEM accumulator (resident across the grid)
    """
    i = pl.program_id(0)

    logits = logits_ref[...].astype(jnp.float32)                 # (TILE_N, C_pad)
    tn, c = logits.shape

    # Numerically stable logsumexp; reuse `shifted` for the target gather too.
    row_max = jnp.max(logits, axis=-1, keepdims=True)            # (TILE_N, 1)
    shifted = logits - row_max                                   # (TILE_N, C_pad)
    lse_off = jnp.log(jnp.sum(jnp.exp(shifted), axis=-1, keepdims=True))

    # Gather shifted[i, target_i] via one-hot compare (no dynamic gather on TPU).
    cls_idx = lax.broadcasted_iota(jnp.int32, (tn, c), 1)
    tgt_shift = jnp.sum(
        jnp.where(cls_idx == targets_ref[...], shifted, 0.0),
        axis=-1, keepdims=True)                                  # (TILE_N, 1)

    per_row = lse_off - tgt_shift                                # (TILE_N, 1)

    # Mask out batch-padding rows (global row index >= true batch size).
    row_idx = i * tile_n + lax.broadcasted_iota(jnp.int32, (tn, 1), 0)
    per_row = jnp.where(row_idx < n_valid, per_row, 0.0)

    partial = jnp.sum(per_row)

    @pl.when(i == 0)
    def _():
        out_ref[0, 0] = 0.0

    out_ref[0, 0] = out_ref[0, 0] + partial


@jax.jit
def cross_entropy_mean(logits, targets):
    """Pallas-backed equivalent of nn.CrossEntropyLoss()(logits, targets)."""
    n, c = logits.shape

    # Lane-dense class dim (multiple of 128), padded with a big NEGATIVE value
    # so it contributes exp(-huge) = 0 to logsumexp.
    c_pad = max(128, _round_up(c, 128))
    neg_fill = float(jnp.finfo(logits.dtype).min) / 2.0

    # Batch tile size: largest multiple of 8 whose f32 block stays under ~1 MiB,
    # so 2 double-buffered inputs + in-kernel temporaries fit every generation's
    # default scoped-VMEM limit (v5e 16 MiB, v6e/v7x 32 MiB).
    max_block_bytes = 1 << 20
    tile_n = max(8, min(_round_up(n, 8),
                        _round_down(max_block_bytes // (c_pad * 4), 8)))
    n_pad = _round_up(n, tile_n)
    num_tiles = n_pad // tile_n

    logits_p = jnp.pad(logits, ((0, n_pad - n), (0, c_pad - c)),
                       constant_values=neg_fill)
    tgt = targets.astype(jnp.int32).reshape(n, 1)
    tgt_p = jnp.pad(tgt, ((0, n_pad - n), (0, 0)), constant_values=-1)

    kernel = functools.partial(_ce_sum_kernel, n_valid=n, tile_n=tile_n)

    total = pl.pallas_call(
        kernel,
        out_shape=jax.ShapeDtypeStruct((1, 1), jnp.float32),
        grid=(num_tiles,),
        in_specs=[
            pl.BlockSpec((tile_n, c_pad), lambda i: (i, 0)),
            pl.BlockSpec((tile_n, 1), lambda i: (i, 0)),
        ],
        out_specs=pl.BlockSpec((1, 1), lambda i: (0, 0),
                               memory_space=pltpu.SMEM),
        compiler_params=pltpu.CompilerParams(
            dimension_semantics=("arbitrary",)),
    )(logits_p, tgt_p)

    return total[0, 0] / jnp.float32(n)


class InceptionLoss:
    """JAX/Pallas port of the PyTorch InceptionLoss module (forward only)."""

    def __call__(self, outputs, aux_outputs1, aux_outputs2, targets):
        # The PyTorch module returns out_loss only; the aux losses and
        # total_loss are dead code and intentionally not computed (perf).
        return cross_entropy_mean(outputs, targets)


def _reference_ce_mean(logits, targets):
    logp = jax.nn.log_softmax(logits.astype(jnp.float32), axis=-1)
    return -jnp.mean(logp[jnp.arange(logits.shape[0]), targets])


if __name__ == "__main__":
    key = jax.random.PRNGKey(0)
    k1, k2, k3, k4, k5, k6 = jax.random.split(key, 6)

    # Small shapes consistent with the module's forward.
    batch, num_classes = 8, 16
    outputs = jax.random.normal(k1, (batch, num_classes), dtype=jnp.float32)
    aux1 = jax.random.normal(k2, (batch, num_classes), dtype=jnp.float32)
    aux2 = jax.random.normal(k3, (batch, num_classes), dtype=jnp.float32)
    targets = jax.random.randint(k4, (batch,), 0, num_classes, dtype=jnp.int32)

    loss_fn = InceptionLoss()
    loss = jax.block_until_ready(loss_fn(outputs, aux1, aux2, targets))

    ref = _reference_ce_mean(outputs, targets)
    assert jnp.allclose(loss, ref, atol=1e-5, rtol=1e-5), (loss, ref)

    # Second check exercising batch padding / masking (non-multiple-of-8 batch).
    b2, c2 = 13, 10
    logits2 = jax.random.normal(k5, (b2, c2), dtype=jnp.float32)
    targets2 = jax.random.randint(k6, (b2,), 0, c2, dtype=jnp.int32)
    loss2 = jax.block_until_ready(cross_entropy_mean(logits2, targets2))
    ref2 = _reference_ce_mean(logits2, targets2)
    assert jnp.allclose(loss2, ref2, atol=1e-5, rtol=1e-5), (loss2, ref2)

    print("KERNEL_OK")
</pallas_src>

<mosaic_0001>
module attributes {stable_mosaic.version = 11 : i64} {
  func.func @_ce_sum_kernel(%arg0: i32, %arg1: memref<8x128xf32, #tpu.memory_space<vmem>>, %arg2: memref<8x1xi32, #tpu.memory_space<vmem>>, %arg3: memref<1x1xf32, #tpu.memory_space<smem>>) attributes {dimension_semantics = [#tpu.dimension_semantics<arbitrary>], iteration_bounds = array<i64: 1>, scalar_prefetch = 0 : i64, scratch_operands = 0 : i64, tpu.core_type = #tpu.core_type<tc>, window_params = [{transform_indices = @transform_0, window_bounds = array<i64: 8, 128>}, {transform_indices = @transform_1, window_bounds = array<i64: 8, 1>}, {transform_indices = @transform_2, window_bounds = array<i64: 1, 1>}]} {
    %c0 = arith.constant 0 : index
    %c0_0 = arith.constant 0 : index
    %0 = vector.load %arg1[%c0, %c0_0] : memref<8x128xf32, #tpu.memory_space<vmem>>, vector<8x128xf32>
    %cst = arith.constant dense<0xFF800000> : vector<8xf32>
    %1 = vector.multi_reduction <maximumf>, %0, %cst [1] : vector<8x128xf32> to vector<8xf32>
    %2 = vector.shape_cast %1 : vector<8xf32> to vector<8x1xf32>
    %3 = vector.broadcast %2 : vector<8x1xf32> to vector<8x128xf32>
    %4 = arith.subf %0, %3 : vector<8x128xf32>
    %5 = math.exp %4 : vector<8x128xf32>
    %cst_1 = arith.constant dense<0.000000e+00> : vector<8xf32>
    %6 = vector.multi_reduction <add>, %5, %cst_1 [1] : vector<8x128xf32> to vector<8xf32>
    %7 = vector.shape_cast %6 : vector<8xf32> to vector<8x1xf32>
    %8 = math.log %7 : vector<8x1xf32>
    %9 = tpu.iota {dimensions = array<i32: 1>} : vector<8x128xi32>
    %c0_2 = arith.constant 0 : index
    %c0_3 = arith.constant 0 : index
    %10 = vector.load %arg2[%c0_2, %c0_3] : memref<8x1xi32, #tpu.memory_space<vmem>>, vector<8x1xi32>
    %11 = vector.broadcast %10 : vector<8x1xi32> to vector<8x128xi32>
    %12 = arith.cmpi eq, %9, %11 : vector<8x128xi32>
    %cst_4 = arith.constant 0.000000e+00 : f32
    %13 = vector.broadcast %cst_4 : f32 to vector<8x128xf32>
    %14 = arith.select %12, %4, %13 : vector<8x128xi1>, vector<8x128xf32>
    %cst_5 = arith.constant dense<0.000000e+00> : vector<8xf32>
    %15 = vector.multi_reduction <add>, %14, %cst_5 [1] : vector<8x128xf32> to vector<8xf32>
    %16 = vector.shape_cast %15 : vector<8xf32> to vector<8x1xf32>
    %17 = arith.subf %8, %16 : vector<8x1xf32>
    %c8_i32 = arith.constant 8 : i32
    %18 = arith.muli %arg0, %c8_i32 : i32
    %19 = tpu.iota {dimensions = array<i32: 0>} : vector<8x1xi32>
    %20 = vector.broadcast %18 : i32 to vector<8x1xi32>
    %21 = arith.addi %20, %19 : vector<8x1xi32>
    %c8_i32_6 = arith.constant 8 : i32
    %22 = vector.broadcast %c8_i32_6 : i32 to vector<8x1xi32>
    %23 = arith.cmpi slt, %21, %22 : vector<8x1xi32>
    %cst_7 = arith.constant 0.000000e+00 : f32
    %24 = vector.broadcast %cst_7 : f32 to vector<8x1xf32>
    %25 = arith.select %23, %17, %24 : vector<8x1xi1>, vector<8x1xf32>
    %26 = vector.shape_cast %25 : vector<8x1xf32> to vector<1x8x1xf32>
    %cst_8 = arith.constant dense<0.000000e+00> : vector<1xf32>
    %27 = vector.multi_reduction <add>, %26, %cst_8 [1, 2] : vector<1x8x1xf32> to vector<1xf32>
    %28 = vector.shape_cast %27 : vector<1xf32> to vector<1x1x1xf32>
    %29 = vector.extract %28[0, 0, 0] : f32 from vector<1x1x1xf32>
    %c0_i32 = arith.constant 0 : i32
    %30 = arith.cmpi eq, %arg0, %c0_i32 : i32
    %31 = arith.extui %30 : i1 to i32
    %c0_i32_9 = arith.constant 0 : i32
    %32 = arith.cmpi ne, %31, %c0_i32_9 : i32
    scf.if %32 {
      %cst_14 = arith.constant 0.000000e+00 : f32
      %c0_15 = arith.constant 0 : index
      %c0_16 = arith.constant 0 : index
      %36 = memref.load %arg3[%c0_15, %c0_16] : memref<1x1xf32, #tpu.memory_space<smem>>
      memref.store %cst_14, %arg3[%c0_15, %c0_16] : memref<1x1xf32, #tpu.memory_space<smem>>
    } else {
    }
    %c0_10 = arith.constant 0 : index
    %c0_11 = arith.constant 0 : index
    %33 = memref.load %arg3[%c0_10, %c0_11] : memref<1x1xf32, #tpu.memory_space<smem>>
    %34 = arith.addf %33, %29 : f32
    %c0_12 = arith.constant 0 : index
    %c0_13 = arith.constant 0 : index
    %35 = memref.load %arg3[%c0_12, %c0_13] : memref<1x1xf32, #tpu.memory_space<smem>>
    memref.store %34, %arg3[%c0_12, %c0_13] : memref<1x1xf32, #tpu.memory_space<smem>>
    return
  }
  func.func @transform_0(%arg0: i32) -> (i32, i32) {
    %c0_i32 = arith.constant 0 : i32
    %c0_i32_0 = arith.constant 0 : i32
    return %arg0, %c0_i32 : i32, i32
  }
  func.func @transform_1(%arg0: i32) -> (i32, i32) {
    %c0_i32 = arith.constant 0 : i32
    %c0_i32_0 = arith.constant 0 : i32
    return %arg0, %c0_i32 : i32, i32
  }
  func.func @transform_2(%arg0: i32) -> (i32, i32) {
    %c0_i32 = arith.constant 0 : i32
    %c0_i32_0 = arith.constant 0 : i32
    %c0_i32_1 = arith.constant 0 : i32
    return %c0_i32, %c0_i32_0 : i32, i32
  }
}

</mosaic_0001>

<bundles_post_ra>
// kernel: cross_entropy_mean.1
= control target key start
LH: loop header
LB: loop body
LE: loop exit
PB: predicated region body
PF: predicated region fallthrough
CT: control target
= control target key end

     0   :  { %s126_s0 = inlined_call_operand.vmem [shape: f32[8,128], index: 0, kind: input, shape index: {}]   ;;  %s127_s1 = inlined_call_operand.vmem [shape: s32[8,1], index: 1, kind: input, shape index: {}]   ;;  %s128_s2 = inlined_call_operand.hbm [shape: f32[1,1], index: 2, kind: output, shape index: {}]  }
   0x1   :  { %v12_v0 = vld [vmem:[%s126_s0] sm:$0xff] }
   0x2   :  { %7 = vsyncpa [#allocation3], 0  ;;  %13 = vmax.xlane.f32.xlu0 %v12_v0  ;;  %v100_v1 = vmov 0   ;;  %v24_v2 = vld [vmem:[%s127_s1] sm:$0xff]  ;;  %v22_v7 = vlaneseq  ;;  %vm40_vm1 = vcmask 7168   ;;  %s66_s13 = sshll.u32 %s128_s2, 4  ;;  %s67_s13 = int_to_ptr.hbm [resolvable:$true] %s66_s13 }
   0x3   :  { %81 = vset.pattern.permute.xlu0 %v100_v1  ;;  %s101_s15 = smov [#allocation2]  }
   0x4   :  { %v23_v8 = vand.u32 127, %v22_v7 }
  0x16   :  { %26 = vperm.xlu0 %81, %v24_v2  }
  0x75   :  { %v14_v3 = vpop.xlane.xlu0 %13 }
  0x76   :  { %v15_v4 = vsub.f32 %v12_v0, %v14_v3 }
  0x78   :  { %v16_v5 = vmul.f32 1.442695, %v15_v4 }
  0x7a   :  { %82 = vpow2.f32 %v16_v5 }
  0x80   :  { %v83_v6 = vpop.eup %82 }
  0x81   :  { %18 = vadd.xlane.f32.xlu1 %v83_v6 }
  0x88   :  { %v27_v9 = vpop.permute.xlu0 %26 }
  0x89   :  { %vm28_vm0 = vcmp.eq.s32.totalorder %v23_v8, %v27_v9 }
  0x8a   :  { %v29_v10 = vsel %vm28_vm0, %v15_v4, 0.0 }
  0x8b   :  { %30 = vadd.xlane.f32.xlu1 %v29_v10 }
  0xf4   :  { %v19_v11 = vpop.xlane.xlu1 %18 }
  0xf5   :  { %84 = vlog2.f32 %v19_v11 }
  0xfb   :  { %v85_v12 = vpop.eup %84 }
  0xfc   :  { %v21_v13 = vmul.f32 0.6931472, %v85_v12 }
  0xfe   :  { %v31_v14 = vpop.xlane.xlu1 %30 }
  0xff   :  { %v32_v15 = vsub.f32 %v21_v13, %v31_v14 }
 0x101   :  { %v41_v16 = vsel %vm40_vm1, %v32_v15, 0.0 }
 0x102   :  { %42 = vadd.xlane.f32.xlu2 %v41_v16 }
 0x175   :  { %v43_v17 = vpop.xlane.xlu2 %42 }
 0x176   :  { %v44_v18 = vrot.slane %v43_v17, 4 }
 0x178   :  { %v45_v19 = vadd.f32 %v44_v18, %v43_v17 }
 0x17a   :  { %v46_v20 = vrot.slane %v45_v19, 2 }
 0x17c   :  { %v47_v21 = vadd.f32 %v46_v20, %v45_v19 }
 0x17e   :  { %v48_v22 = vrot.slane %v47_v21, 1 }
 0x180   :  { %v49_v23 = vadd.f32 %v48_v22, %v47_v21 }
 0x182   :  { %76 = vpush %v49_v23 }
 0x1b3   :  { %s77_s14 = spop %76 }
 0x1b4   :  { %60 = sst [smem:[#allocation2]] %s77_s14 }
 0x1b5   :  { %69 = dma.smem_to_hbm %s101_s15, 16, %s67_s13, [#allocation3]  }
 0x1b6   :  { %98 = dma.done.wait [#allocation3], 16  }
 0x1b7   :  { %99 = vsyncadd [#allocation3], 4294967280 }
 0x1b8   :  { %74 = sfence }
 0x1b9   :  { %75 = vsyncpa [#allocation3], 1 }

</bundles_post_ra>
